<compile_context>
chip_gen: v7x
topology: tpu7x:2x2x1
jax: 0.10.0
libtpu: 0.0.40
codegen_flags: <defaults>
</compile_context>

<pallas_src>
import random
from functools import partial

import jax
import jax.numpy as jnp
from jax.experimental import pallas as pl
from jax.experimental.pallas import tpu as pltpu


# ----------------------------- kernel body ----------------------------------


def _silence_shift_kernel(offset_ref, x_ref, o_ref):
    # offset_ref : SMEM scalar-prefetch ref, shape (1,), int32
    # x_ref/o_ref: (TB, TT) VMEM tiles of the (B, T) audio.
    j = pl.program_id(1)  # time-axis grid index
    _, tt = x_ref.shape
    off = offset_ref[0]
    block_start = j * tt
    block_end = block_start + tt

    # Case 1: block entirely inside the zeroed prefix -> write zeros, never
    # read x (its input DMA was deduplicated away by the index_map anyway).
    @pl.when(block_end <= off)
    def _():
        o_ref[...] = jnp.zeros_like(o_ref)

    # Case 2: block entirely past the offset -> straight copy.
    @pl.when(block_start >= off)
    def _():
        o_ref[...] = x_ref[...]

    # Case 3: the single straddling block -> mask with a block-local lane iota
    # (sublane-invariant, so a (1, tt) compare broadcast is enough).
    @pl.when(jnp.logical_and(block_start < off, off < block_end))
    def _():
        col = jax.lax.broadcasted_iota(jnp.int32, (1, tt), 1)
        keep = col >= (off - block_start)
        o_ref[...] = jnp.where(keep, x_ref[...], jnp.zeros((), x_ref.dtype))


# --------------------------- tiling heuristics -------------------------------


def _vmem_budgets():
    """(per_block_budget_bytes, scoped_vmem_limit_bytes), generation-aware."""
    per_block, vmem_limit = 4 << 20, 32 << 20  # conservative fallback
    try:
        info = pltpu.get_tpu_info()
        cap = int(getattr(info, "vmem_capacity_bytes", 0) or 0)
        if cap >= (128 << 20):          # v5e / v6e: 128 MiB physical VMEM
            per_block, vmem_limit = 8 << 20, 64 << 20
        elif cap > 0:                   # v7x: 64 MiB physical VMEM per TC
            per_block, vmem_limit = 6 << 20, 32 << 20
    except Exception:
        pass
    return per_block, vmem_limit


def _pick_batch_tile(B, max_tb=64):
    """Small sublane tile (multiple of 8, <= 64) so each DMA run along the
    row-major time axis is long and contiguous.  Falls back to the full batch
    dim when B is not 8-aligned (full-extent blocks are always legal)."""
    if B % 8 != 0:
        return B
    best = 8
    t = 8
    while t <= min(B, max_tb):
        if B % t == 0:
            best = t
        t += 8
    return best


def _pick_time_tile(T, tb, dtype_bytes, per_block_budget_bytes,
                    want_multiple_blocks):
    """Largest lane tile (multiple of 128 dividing T) within the per-block
    VMEM budget.  Total VMEM use is ~4x a block (in/out x double buffer),
    which stays under the scoped limits chosen in _vmem_budgets()."""
    cap = per_block_budget_bytes // max(1, tb * dtype_bytes)
    cap = max(128, min(cap, T, 1 << 17))
    best = None
    t = 128
    while t <= cap:
        if T % t == 0:
            best = t
        t += 128
    if best is None:
        return T  # ragged T (no multiple-of-128 divisor): one full-width block
    if want_multiple_blocks and T // best < 2:
        # Guarantee >= 2 time blocks so v7x can shard across both TensorCores.
        alt = None
        t = 128
        while t <= T // 2:
            if T % t == 0:
                alt = t
            t += 128
        if alt is not None:
            best = alt
    return best


# ------------------------------ pallas wrapper --------------------------------


@partial(jax.jit, static_argnames=("tile_b", "tile_t", "vmem_limit"))
def _silence_shift_impl(audio, offset_arr, tile_b, tile_t, vmem_limit):
    B, T = audio.shape

    def in_index_map(i, j, off):
        # All fully-zeroed time blocks map to block (i, 0): consecutive grid
        # steps with an unchanged input block index skip the input DMA, so the
        # zeroed prefix is never re-read from HBM.  The kernel never reads x
        # in that branch, so any stale data there is harmless.
        fully_zero = (j + 1) * tile_t <= off[0]
        return (i, jnp.where(fully_zero, 0, j))

    grid_spec = pltpu.PrefetchScalarGridSpec(
        num_scalar_prefetch=1,
        grid=(pl.cdiv(B, tile_b), T // tile_t),
        in_specs=[pl.BlockSpec((tile_b, tile_t), in_index_map)],
        out_specs=pl.BlockSpec((tile_b, tile_t), lambda i, j, off: (i, j)),
    )

    return pl.pallas_call(
        _silence_shift_kernel,
        out_shape=jax.ShapeDtypeStruct((B, T), audio.dtype),
        grid_spec=grid_spec,
        compiler_params=pltpu.CompilerParams(
            dimension_semantics=("parallel", "parallel"),
            vmem_limit_bytes=vmem_limit,
        ),
    )(offset_arr, audio)


def silence_shift(audio: jax.Array, offset) -> jax.Array:
    """Zero out the first `offset` samples of each row of `audio` (B, T)."""
    B, T = audio.shape
    offset = int(offset)

    # Host-side fast paths (offset is a concrete Python int at call time).
    if offset <= 0:
        return audio                      # values identical; arrays are immutable
    if offset >= T:
        return jnp.zeros_like(audio)      # write-only, never reads the input

    dtype_bytes = jnp.dtype(audio.dtype).itemsize
    per_block_budget, vmem_limit = _vmem_budgets()
    tile_b = _pick_batch_tile(B)
    grid_b = pl.cdiv(B, tile_b)
    tile_t = _pick_time_tile(T, tile_b, dtype_bytes, per_block_budget,
                             want_multiple_blocks=(grid_b < 2))
    assert T % tile_t == 0, "time tile must divide T"

    offset_arr = jnp.asarray([offset], dtype=jnp.int32)
    return _silence_shift_impl(audio, offset_arr, tile_b, tile_t, vmem_limit)


# ------------------------------- module port ----------------------------------


class SilenceShiftJax:
    """Deterministic JAX/Pallas port of the PyTorch SilenceShift module."""

    # TODO(synk): the random shift draw stays on the host (random.randint), as
    # in the PyTorch module; it is not a kernel-side op.

    def __init__(self, sample_rate, min_shift_ms=0, max_shift_ms=1000, seed=0):
        self.sample_rate = sample_rate
        self.min_shift_ms = min_shift_ms
        self.max_shift_ms = max_shift_ms
        self._rng = random.Random(seed)  # deterministic stand-in for torch's RNG

    def calc_offset(self, ms):
        return int(ms * (self.sample_rate / 1000))

    def __call__(self, audio):
        shift_ms = self._rng.randint(self.min_shift_ms, self.max_shift_ms)
        offset = self.calc_offset(shift_ms)
        return silence_shift(audio, offset), offset


# ---------------------------------- demo --------------------------------------


if __name__ == "__main__":
    key = jax.random.PRNGKey(0)
    B, T = 8, 1024            # small: 8 clips of 1024 samples
    sample_rate = 1024        # 1024 Hz -> T is exactly 1 second
    audio = jax.random.normal(key, (B, T), dtype=jnp.float32)

    module = SilenceShiftJax(sample_rate, min_shift_ms=0, max_shift_ms=500, seed=0)
    out, offset = module(audio)
    out = jax.block_until_ready(out)

    # Reference check (plain JAX) for the module's random offset.
    ref = audio.at[:, :min(offset, T)].set(0.0)
    assert out.shape == audio.shape and out.dtype == audio.dtype
    assert bool(jnp.allclose(out, ref)), "mismatch vs reference"

    # Extra coverage: fast paths (0, T), block-boundary, straddle in each time
    # block, and near-full zeroing.  All kernel launches reuse one compilation
    # because the offset is a runtime int32 array.
    for off in (0, 1, 300, 512, 700, T - 1, T):
        got = jax.block_until_ready(silence_shift(audio, off))
        exp = audio.at[:, :off].set(0.0)
        assert bool(jnp.allclose(got, exp)), f"mismatch at offset={off}"

    print("KERNEL_OK")
</pallas_src>

<mosaic_0001>
module attributes {stable_mosaic.version = 11 : i64} {
  func.func @_silence_shift_kernel(%arg0: i32, %arg1: i32, %arg2: memref<1xi32, #tpu.memory_space<smem>>, %arg3: memref<8x512xf32, #tpu.memory_space<vmem>>, %arg4: memref<8x512xf32, #tpu.memory_space<vmem>>) attributes {dimension_semantics = [#tpu.dimension_semantics<parallel>, #tpu.dimension_semantics<parallel>], iteration_bounds = array<i64: 1, 2>, scalar_prefetch = 1 : i64, scratch_operands = 0 : i64, tpu.core_type = #tpu.core_type<tc>, window_params = [{transform_indices = @transform_0, window_bounds = array<i64: 8, 512>}, {transform_indices = @transform_1, window_bounds = array<i64: 8, 512>}]} {
    %c0 = arith.constant 0 : index
    %0 = memref.load %arg2[%c0] : memref<1xi32, #tpu.memory_space<smem>>
    %c512_i32 = arith.constant 512 : i32
    %1 = arith.muli %arg1, %c512_i32 : i32
    %c512_i32_0 = arith.constant 512 : i32
    %2 = arith.addi %1, %c512_i32_0 : i32
    %3 = arith.cmpi sle, %2, %0 : i32
    %4 = arith.extui %3 : i1 to i32
    %c0_i32 = arith.constant 0 : i32
    %5 = arith.cmpi ne, %4, %c0_i32 : i32
    scf.if %5 {
      %cst = arith.constant 0.000000e+00 : f32
      %14 = vector.broadcast %cst : f32 to vector<8x512xf32>
      %c0_3 = arith.constant 0 : index
      %c0_4 = arith.constant 0 : index
      %15 = vector.load %arg4[%c0_3, %c0_4] : memref<8x512xf32, #tpu.memory_space<vmem>>, vector<8x512xf32>
      tpu.vector_store %arg4[%c0_3, %c0_4], %14 {strides = array<i32>} : memref<8x512xf32, #tpu.memory_space<vmem>>, vector<8x512xf32>,
    } else {
    }
    %6 = arith.cmpi sge, %1, %0 : i32
    %7 = arith.extui %6 : i1 to i32
    %c0_i32_1 = arith.constant 0 : i32
    %8 = arith.cmpi ne, %7, %c0_i32_1 : i32
    scf.if %8 {
      %c0_3 = arith.constant 0 : index
      %c0_4 = arith.constant 0 : index
      %14 = vector.load %arg3[%c0_3, %c0_4] : memref<8x512xf32, #tpu.memory_space<vmem>>, vector<8x512xf32>
      %c0_5 = arith.constant 0 : index
      %c0_6 = arith.constant 0 : index
      %15 = vector.load %arg4[%c0_5, %c0_6] : memref<8x512xf32, #tpu.memory_space<vmem>>, vector<8x512xf32>
      tpu.vector_store %arg4[%c0_5, %c0_6], %14 {strides = array<i32>} : memref<8x512xf32, #tpu.memory_space<vmem>>, vector<8x512xf32>,
    } else {
    }
    %9 = arith.cmpi slt, %1, %0 : i32
    %10 = arith.cmpi slt, %0, %2 : i32
    %11 = arith.andi %9, %10 : i1
    %12 = arith.extui %11 : i1 to i32
    %c0_i32_2 = arith.constant 0 : i32
    %13 = arith.cmpi ne, %12, %c0_i32_2 : i32
    scf.if %13 {
      %14 = tpu.iota {dimensions = array<i32: 1>} : vector<1x512xi32>
      %15 = arith.subi %0, %1 : i32
      %16 = vector.broadcast %15 : i32 to vector<1x512xi32>
      %17 = arith.cmpi sge, %14, %16 : vector<1x512xi32>
      %c0_3 = arith.constant 0 : index
      %c0_4 = arith.constant 0 : index
      %18 = vector.load %arg3[%c0_3, %c0_4] : memref<8x512xf32, #tpu.memory_space<vmem>>, vector<8x512xf32>
      %cst = arith.constant 0.000000e+00 : f32
      %19 = vector.shape_cast %17 : vector<1x512xi1> to vector<1x512xi1>
      %20 = vector.broadcast %19 : vector<1x512xi1> to vector<8x512xi1>
      %21 = vector.broadcast %cst : f32 to vector<8x512xf32>
      %22 = arith.select %20, %18, %21 : vector<8x512xi1>, vector<8x512xf32>
      %c0_5 = arith.constant 0 : index
      %c0_6 = arith.constant 0 : index
      %23 = vector.load %arg4[%c0_5, %c0_6] : memref<8x512xf32, #tpu.memory_space<vmem>>, vector<8x512xf32>
      tpu.vector_store %arg4[%c0_5, %c0_6], %22 {strides = array<i32>} : memref<8x512xf32, #tpu.memory_space<vmem>>, vector<8x512xf32>,
    } else {
    }
    return
  }
  func.func @transform_0(%arg0: i32, %arg1: i32, %arg2: memref<1xi32, #tpu.memory_space<smem>>) -> (i32, i32) {
    %c1_i32 = arith.constant 1 : i32
    %0 = arith.addi %arg1, %c1_i32 : i32
    %c512_i32 = arith.constant 512 : i32
    %1 = arith.muli %0, %c512_i32 : i32
    %c0 = arith.constant 0 : index
    %2 = memref.load %arg2[%c0] : memref<1xi32, #tpu.memory_space<smem>>
    %3 = arith.cmpi sle, %1, %2 : i32
    %c0_i32 = arith.constant 0 : i32
    %4 = arith.select %3, %c0_i32, %arg1 : i32
    %c0_i32_0 = arith.constant 0 : i32
    return %arg0, %4 : i32, i32
  }
  func.func @transform_1(%arg0: i32, %arg1: i32, %arg2: memref<1xi32, #tpu.memory_space<smem>>) -> (i32, i32) {
    %c0_i32 = arith.constant 0 : i32
    return %arg0, %arg1 : i32, i32
  }
}

</mosaic_0001>

<bundles_post_ra>
// kernel: _silence_shift_impl.1
= control target key start
LH: loop header
LB: loop body
LE: loop exit
PB: predicated region body
PF: predicated region fallthrough
CT: control target
= control target key end

     0   :  { %s842_s0 = inlined_call_operand.<no memory space> [shape: s32[1], index: 0, kind: input, shape index: {}]   ;;  %s843_s1 = inlined_call_operand.hbm [shape: f32[8,1024], index: 1, kind: input, shape index: {}]   ;;  %s844_s2 = inlined_call_operand.hbm [shape: f32[8,1024], index: 2, kind: output, shape index: {}]  }
   0x1   :  { %7 = sst [smem:[#allocation3]] %s842_s0 }
   0x2   :  { %8 = vsyncpa [#allocation5], 0 }
   0x3   :  { %10 = vsyncpa [#allocation5 + $0x1], 0 }
   0x4   :  { %11 = vsyncpa [#allocation6], 0 }
   0x5   :  { %13 = vsyncpa [#allocation6 + $0x1], 0  ;;  %s611_s11 = smov 0   ;;  %s613_s12 = smov 0  }
   0x6   :  { %s615_s13 = smov 0   ;;  %s617_s14 = smov 0  }
   0x7   :  { %s619_s15 = smov 0   ;;  %s621_s16 = smov 0  }
   0x8   :  { %s623_s17 = smov 0   ;;  %s625_s18 = smov 0  }
   0x9   :  { %s627_s0 = smov 0  }
   0xa LB: > { %s336_s19 = sadd.s32 4294967295, %s588_s0   ;;  %s337_s20 = sadd.s32 4294967294, %s588_s0   ;;  %s588_s0 = sphi %s627_s0, %s19_s0   ;;  %s584_s18 = sphi %s625_s18, %s863_s18   ;;  %s580_s17 = sphi %s623_s17, %s862_s17   ;;  %s576_s16 = sphi %s621_s16, %s861_s16   ;;  %s572_s15 = sphi %s619_s15, %s860_s15   ;;  %s568_s14 = sphi %s617_s14, %s859_s14   ;;  %s564_s13 = sphi %s615_s13, %s858_s13   ;;  %s560_s12 = sphi %s613_s12, %s857_s12   ;;  %s556_s11 = sphi %s611_s11, %s856_s11  }
   0xb   : > { %s28_s21 = sadd.s32 1, %s584_s18  ;;  %s357_s22 = sshll.u32 %s584_s18, 9 }
   0xc   : > { %p29_p0 = scmp.ge.s32.totalorder %s28_s21, 2  ;;  %s358_s23 = sadd.s32 512, %s357_s22 }
   0xd   : > { %s37_s24 = sld [smem:[#allocation3]]  ;;  %s50_s25 = sadd.s32 1, %s576_s16 }
   0xe   : > { %s865_s21 = smov (%p29_p0, %s28_s21), 0  ;;  %p57_p1 = scmp.ne.s32.totalorder %s576_s16, %s572_s15 }
   0xf   : > { %p58_p2 = scmp.eq.s32.totalorder %s588_s0, 0  ;;  %s359_s26 = sshll.u32 %s865_s21, 9 }
  0x10   : > { %p63_p3 = scmp.ne.s32.totalorder %s572_s15, %s568_s14  ;;  %s360_s27 = sadd.s32 512, %s359_s26 }
  0x11   : > { %p666_p4 = por %p58_p2, %p57_p1  ;;  %p64_p5 = scmp.eq.s32.totalorder %s336_s19, 0 }
  0x12   : > { %s74_s29 = ssub.s32 %s584_s18, %s865_s21  ;;  %s78_s5 = sadd.s32 1, %s564_s13 }
  0x13   : > { %p38_p6 = scmp.le.s32.totalorder %s358_s23, %s37_s24  ;;  %p43_p7 = scmp.le.s32.totalorder %s360_s27, %s37_s24 }
  0x14   : > { %p672_p8 = por %p64_p5, %p63_p3  ;;  %p76_p9 = scmp.eq.s32.totalorder %s74_s29, 0 }
  0x15   : > { %s39_s3 = scalar_select %p38_p6, 0, %s584_s18 }
  0x16   : > { %s44_s4 = scalar_select %p43_p7, 0, %s865_s21 }
  0x17   : > { %p88_p10 = scmp.ne.s32.totalorder %s564_s13, %s560_s12  ;;  %p89_p11 = scmp.eq.s32.totalorder %s336_s19, 1 }
  0x18   : > { %s46_s6 = ssub.s32 %s39_s3, %s44_s4  ;;  %p94_p13 = scmp.ne.s32.totalorder %s560_s12, %s556_s11 }
  0x19   : > { %p48_p12 = scmp.eq.s32.totalorder %s46_s6, 0  ;;  %p689_p0 = por %p89_p11, %p88_p10 }
  0x1a   : > { %s684_s7 = scalar_select %p76_p9, %s564_s13, %s78_s5  }
  0x1b   : > { %s687_s8 = scalar_select %p48_p12, %s576_s16, %s50_s25  }
  0x1c   : > { %s848_s9 = scalar_select %p689_p0, 1, 0 }
  0x1d   : > { %p95_p1 = scmp.eq.s32.totalorder %s337_s20, 1  ;;  %p377_p3 = scmp.lt.s32.totalorder %s588_s0, 2 }
  0x1e   : > { %s115_s14 = sand.u32 1, %s576_s16   ;;  %s363_s22 = sshll.u32 %s39_s3, 9 }
  0x1f   : > { %p697_p5 = por %p95_p1, %p94_p13  ;;  %s342_s19 = sshll.u32 %s115_s14, 5 }
  0x20   : > { %s705_s25 = scalar_lea.hbm %s843_s1, %s363_s22  ;;  %s119_s26 = scalar_lea.vmem [#allocation4], %s342_s19 }
  0x21   : > { %s849_s10 = scalar_select %p697_p5, 1, 0 }
  0x22   : > { %s134_s20 = sshll.u32 %s119_s26, 4  ;;  %p711_p6 = pnand %p377_p3, %p666_p4  ;;  %s707_s20 = int_to_ptr.vmem [resolvable:$true] %s134_s20 }
  0x23   : > { %s116_s29 = scalar_lea.sflag [#allocation5], %s115_s14  ;;  %s452_s3 = scalar_lea.hbm %s705_s25, 512 }
  0x24   : > { %p453_p10 = scmp.ne.s32.totalorder %s705_s25, %s452_s3  ;;  %p454_p11 = pneg %p711_p6 }
  0x25   : > { %s457_s28 = scalar_lea.hbm %s843_s1, 1024  ;;  %p458_p4 = scmp.lt.u32.totalorder %s705_s25, %s843_s1 }
  0x26   : > { %p455_p12 = pnand %p454_p11, %p453_p10  ;;  %p459_p1 = scmp.lt.u32.totalorder %s457_s28, %s452_s3 }
  0x27   : > { %p461_p2 = scmp.lt.u32.totalorder %s452_s3, %s705_s25 }
  0x28   : > { %p456_p13 = pneg %p455_p12  ;;  %p460_p3 = por %p459_p1, %p458_p4 }
  0x2a   : > { %p462_p7 = por %p461_p2, %p460_p3 }
  0x2c   : > { %p463_p9 = pnand %p462_p7, %p456_p13 }
  0x2e   : > { %466 = shalt.err (!%p463_p9)
}
  0x2f   : > { %s467_s14 = scalar_lea.vmem %s707_s20, 512  ;;  %s590_s22 = smov [#allocation4]  }
  0x30   : > { %p468_p10 = scmp.ne.s32.totalorder %s707_s20, %s467_s14  ;;  %s472_s23 = sshll.u32 %s590_s22, 4  ;;  %s473_s23 = int_to_ptr.vmem [resolvable:$false] %s472_s23 }
  0x31   : > { %s474_s24 = scalar_lea.vmem %s473_s23, 1024  ;;  %p475_p0 = scmp.lt.s32.totalorder %s707_s20, %s473_s23 }
  0x32   : > { %p470_p12 = pnand %p468_p10, %p454_p11  ;;  %p476_p4 = scmp.lt.s32.totalorder %s474_s24, %s467_s14 }
  0x34   : > { %p471_p5 = pneg %p470_p12  ;;  %p477_p1 = por %p476_p4, %p475_p0 }
  0x36   : > { %p478_p2 = pnand %p477_p1, %p471_p5 }
  0x38   : > { %481 = shalt.err (!%p478_p2)
}
  0x39   : > { %372 = dma.hbm_to_vmem [thread:$0]  (!%p711_p6), %s705_s25, 512, %s707_s20, %s116_s29  }
  0x3a   : > { %p851_p7 = scmp.lt.s32.totalorder %s588_s0, 3  ;;  %p852_p9 = scmp.ge.s32.totalorder %s588_s0, 1 }
  0x3c   : > { %p140_p11 = pnand %p852_p9, %p851_p7 }
  0x3d   : > { %s145_s26 = sand.u32 (!%p140_p11), 1, %s572_s15  }
  0x3e   : > { %143 = sbr.rel (%p140_p11) target bundleno = 133 (0x85), region = 24  ;;  %s347_s3 = sshll.u32 (!%p140_p11), %s145_s26, 5 }
  0x3f   : > { %s146_s4 = scalar_lea.sflag (!%p140_p11), [#allocation5], %s145_s26  ;;  %s747_s5 = scalar_lea.vmem (!%p140_p11), [#allocation4], %s347_s3 }
  0x45   : > { %547 = dma.done.wait (%p672_p8), %s146_s4, 512  }
  0x46   : > { %549 = vsyncadd (%p672_p8), %s146_s4, 4294966784  ;;  %s165_s25 = sand.u32 1, %s560_s12   ;;  %s755_s20 = sshll.u32 %s580_s17, 9 }
  0x47   : > { %s175_s27 = sld [smem:[#allocation3]]  ;;  %s348_s29 = sshll.u32 %s165_s25, 5 }
  0x48   : > { %s177_s28 = sadd.s32 512, %s755_s20  ;;  %s760_s6 = scalar_lea.vmem [#allocation7], %s348_s29 }
  0x4d   : > { %p350_p0 = scmp.gt.s32.totalorder %s177_s28, %s175_s27 }
  0x4e   : > { %v591_v0 = vmov (!%p350_p0), 0.0  }
  0x4f   : > { %181 = sbr.rel (%p350_p0) target bundleno = 86 (0x56), region = 32  ;;  %182 = vst [vmem:[%s760_s6] sm:$0xff] (!%p350_p0), %v591_v0  ;;  %183 = vst [vmem:[%s760_s6 + $0x8] sm:$0xff] (!%p350_p0), %v591_v0 }
  0x50   : > { %184 = vst [vmem:[%s760_s6 + $0x10] sm:$0xff] (!%p350_p0), %v591_v0  ;;  %185 = vst [vmem:[%s760_s6 + $0x18] sm:$0xff] (!%p350_p0), %v591_v0 }
  0x56 PF: > { %p351_p8 = scmp.lt.s32.totalorder %s755_s20, %s175_s27 }
  0x57   : > { %v190_v1 = vld [vmem:[%s747_s5] sm:$0xff] (!%p351_p8)  ;;  %v191_v2 = vld [vmem:[%s747_s5 + $0x8] sm:$0xff] (!%p351_p8)  ;;  %v192_v3 = vld [vmem:[%s747_s5 + $0x10] sm:$0xff] (!%p351_p8) }
  0x58   : > { %189 = sbr.rel (%p351_p8) target bundleno = 95 (0x5f), region = 36  ;;  %194 = vst [vmem:[%s760_s6] sm:$0xff] (!%p351_p8), %v190_v1  ;;  %195 = vst [vmem:[%s760_s6 + $0x8] sm:$0xff] (!%p351_p8), %v191_v2  ;;  %v193_v4 = vld [vmem:[%s747_s5 + $0x18] sm:$0xff] (!%p351_p8) }
  0x59   : > { %196 = vst [vmem:[%s760_s6 + $0x10] sm:$0xff] (!%p351_p8), %v192_v3  ;;  %197 = vst [vmem:[%s760_s6 + $0x18] sm:$0xff] (!%p351_p8), %v193_v4 }
  0x5f PF: > { %p199_p5 = scmp.lt.s32.totalorder %s175_s27, %s177_s28 }
  0x61   : > { %p200_p6 = pnand %p351_p8, %p199_p5 }
  0x62   : > { %v204_v5 = vlaneseq (!%p200_p6)  ;;  %s209_s17 = ssub.s32 (!%p200_p6), %s175_s27, %s755_s20  ;;  %v215_v8 = vld [vmem:[%s747_s5] sm:$0xff] (!%p200_p6)  ;;  %v216_v10 = vld [vmem:[%s747_s5 + $0x8] sm:$0xff] (!%p200_p6)  ;;  %v217_v12 = vld [vmem:[%s747_s5 + $0x10] sm:$0xff] (!%p200_p6) }
  0x63   : > { %203 = sbr.rel (%p200_p6) target bundleno = 108 (0x6c), region = 40  ;;  %v210_v6 = vstv (!%p200_p6), %s209_s17  ;;  %v218_v14 = vld [vmem:[%s747_s5 + $0x18] sm:$0xff] (!%p200_p6) }
  0x64   : > { %v205_v7 = vand.u32 (!%p200_p6), 127, %v204_v5 }
  0x66   : > { %vm211_vm0 = vcmp.ge.s32.totalorder (!%p200_p6), %v205_v7, %v210_v6  ;;  %v206_v9 = vadd.s32 (!%p200_p6), 128, %v205_v7  ;;  %v207_v11 = vadd.s32 (!%p200_p6), 256, %v205_v7  ;;  %v208_v13 = vadd.s32 (!%p200_p6), 384, %v205_v7 }
  0x67   : > { %v227_v15 = vsel (!%p200_p6), %vm211_vm0, %v215_v8, 0.0 }
  0x68   : > { %231 = vst [vmem:[%s760_s6] sm:$0xff] (!%p200_p6), %v227_v15  ;;  %vm212_vm1 = vcmp.ge.s32.totalorder (!%p200_p6), %v206_v9, %v210_v6  ;;  %vm213_vm2 = vcmp.ge.s32.totalorder (!%p200_p6), %v207_v11, %v210_v6  ;;  %vm214_vm3 = vcmp.ge.s32.totalorder (!%p200_p6), %v208_v13, %v210_v6 }
  0x69   : > { %v228_v16 = vsel (!%p200_p6), %vm212_vm1, %v216_v10, 0.0  ;;  %v229_v17 = vsel (!%p200_p6), %vm213_vm2, %v217_v12, 0.0  ;;  %v230_v18 = vsel (!%p200_p6), %vm214_vm3, %v218_v14, 0.0 }
  0x6a   : > { %232 = vst [vmem:[%s760_s6 + $0x8] sm:$0xff] %v228_v16  ;;  %233 = vst [vmem:[%s760_s6 + $0x10] sm:$0xff] %v229_v17 }
  0x6b   : > { %234 = vst [vmem:[%s760_s6 + $0x18] sm:$0xff] %v230_v18 }
  0x6c PF: > { %s788_s14 = scalar_lea.hbm %s844_s2, %s755_s20  ;;  %s252_s22 = sshll.u32 %s760_s6, 4  ;;  %s253_s22 = int_to_ptr.vmem [resolvable:$true] %s252_s22 }
  0x6d   : > { %s236_s23 = scalar_lea.sflag [#allocation6], %s165_s25  ;;  %s482_s24 = scalar_lea.vmem %s253_s22, 512 }
  0x6e   : > { %p483_p13 = scmp.ne.s32.totalorder %s253_s22, %s482_s24  ;;  %p853_p3 = scmp.ne.s32.totalorder %s848_s9, 0 }
  0x6f   : > { %s592_s26 = smov [#allocation7]  }
  0x70   : > { %p484_p10 = pnand %p483_p13, %p853_p3  ;;  %s486_s3 = sshll.u32 %s592_s26, 4  ;;  %s487_s3 = int_to_ptr.vmem [resolvable:$false] %s486_s3 }
  0x71   : > { %s488_s4 = scalar_lea.vmem %s487_s3, 1024  ;;  %p489_p4 = scmp.lt.s32.totalorder %s253_s22, %s487_s3 }
  0x72   : > { %p485_p12 = pneg %p484_p10  ;;  %p490_p1 = scmp.lt.s32.totalorder %s488_s4, %s482_s24 }
  0x74   : > { %p491_p2 = por %p490_p1, %p489_p4 }
  0x76   : > { %p492_p7 = pnand %p491_p2, %p485_p12 }
  0x78   : > { %495 = shalt.err (!%p492_p7)
}
  0x79   : > { %s496_s5 = scalar_lea.hbm %s788_s14, 512  ;;  %s500_s27 = scalar_lea.hbm %s844_s2, 1024 }
  0x7a   : > { %p497_p9 = scmp.ne.s32.totalorder %s788_s14, %s496_s5  ;;  %p501_p8 = scmp.lt.u32.totalorder %s788_s14, %s844_s2 }
  0x7b   : > { %p502_p5 = scmp.lt.u32.totalorder %s500_s27, %s496_s5  ;;  %p504_p13 = scmp.lt.u32.totalorder %s496_s5, %s788_s14 }
  0x7c   : > { %p498_p11 = pnand %p497_p9, %p853_p3 }
  0x7d   : > { %p503_p6 = por %p502_p5, %p501_p8 }
  0x7e   : > { %p499_p0 = pneg %p498_p11 }
  0x7f   : > { %p505_p10 = por %p504_p13, %p503_p6 }
  0x81   : > { %p506_p12 = pnand %p505_p10, %p499_p0 }
  0x83   : > { %509 = shalt.err (!%p506_p12)
}
  0x84   : > { %367 = dma.vmem_to_hbm [thread:$0]  (%p853_p3), %s253_s22, 512, %s788_s14, %s236_s23  }
  0x85 PF: > { %s264_s6 = sand.u32 1, %s556_s11   ;;  %p854_p4 = scmp.ne.s32.totalorder %s849_s10, 0 }
  0x86   : > { %p855_p1 = scmp.ge.s32.totalorder %s588_s0, 2  ;;  %s265_s17 = scalar_lea.sflag [#allocation6], %s264_s6 }
  0x88   : > { %p374_p2 = pnand %p855_p1, %p854_p4 }
  0x8a   : > { %551 = dma.done.wait (!%p374_p2), %s265_s17, 512  }
  0x8b   : > { %553 = vsyncadd (!%p374_p2), %s265_s17, 4294966784  ;;  %s19_s0 = sadd.s32 1, %s588_s0   ;;  %s856_s11 = smov %s560_s12 }
  0x8c   : > { %p16_p7 = scmp.ge.s32.totalorder %s19_s0, 4   ;;  %s857_s12 = smov %s564_s13 }
  0x8d   : > { %s858_s13 = smov %s684_s7  ;;  %s859_s14 = smov %s572_s15 }
  0x8e   : > { %s860_s15 = smov %s576_s16  ;;  %s861_s16 = smov %s687_s8 }
  0x8f   : > { %s862_s17 = smov %s584_s18  ;;  %s863_s18 = smov %s865_s21 }
  0x90   :  { %18 = sbr.rel (!%p16_p7) target bundleno = 10 (0xa), region = 81 }
  0x97   :  { %270 = vsyncpa [#allocation5], 1 }
  0x98   :  { %272 = vsyncpa [#allocation5 + $0x1], 1 }
  0x99   :  { %273 = vsyncpa [#allocation6], 1 }
  0x9a   :  { %275 = vsyncpa [#allocation6 + $0x1], 1 }

</bundles_post_ra>
